<compile_context>
chip_gen: v7x
topology: tpu7x:2x2x1
jax: 0.10.0
libtpu: 0.0.40
codegen_flags: <defaults>
</compile_context>

<pallas_src>
import jax
import jax.numpy as jnp
from jax.experimental import pallas as pl
from jax.experimental.pallas import tpu as pltpu


def q_mlp_kernel(obs_ref, act_ref, w1o_ref, w1a_ref, b1_ref, w2_ref, b2_ref,
                 w3_ref, b3_ref, o_ref):
    # obs: (Do, TB), act: (Da, TB)            -- batch on the lane axis (lane-dense)
    # w1o: (H1, Do), w1a: (H1, Da), b1: (H1, 1)
    # w2:  (H2, H1), b2: (H2, 1)
    # w3:  (1,  H2), b3: SMEM (1,)
    # o:   (1,  TB)
    # Fused concat:  W1^T @ concat(obs, act)^T == W1o^T @ obs^T + W1a^T @ act^T.
    h1 = (jnp.dot(w1o_ref[...], obs_ref[...], preferred_element_type=jnp.float32)
          + jnp.dot(w1a_ref[...], act_ref[...], preferred_element_type=jnp.float32)
          + b1_ref[...])
    h1 = jnp.maximum(h1, 0.0)                                        # ReLU
    h2 = (jnp.dot(w2_ref[...], h1, preferred_element_type=jnp.float32)
          + b2_ref[...])
    h2 = jnp.maximum(h2, 0.0)                                        # ReLU
    qT = jnp.dot(w3_ref[...], h2, preferred_element_type=jnp.float32)
    o_ref[...] = (qT + b3_ref[0]).astype(o_ref.dtype)                # Identity out act.


def _round_up(x, m):
    return ((x + m - 1) // m) * m


def mlp_q_function(obs, act, params, *, tile_b_max=4096):
    """Pallas implementation of MLPQFunction.forward(obs, act) -> (B,)."""
    w1, b1, w2, b2, w3, b3 = params
    obs = obs.astype(jnp.float32)
    act = act.astype(jnp.float32)
    B, obs_dim = obs.shape
    act_dim = act.shape[1]
    H1 = w1.shape[1]
    H2 = w2.shape[1]

    # --- Weight prep (once per call; cheap at these sizes). ---------------------------
    # Split W1 so the obs/act concat happens inside the kernel; transpose so the
    # kernel works in (features, batch) orientation (batch on lanes).
    w1o_t = w1[:obs_dim].T          # (H1, Do)
    w1a_t = w1[obs_dim:].T          # (H1, Da)
    w2_t = w2.T                     # (H2, H1)
    b1_c = b1.reshape(H1, 1)        # column bias, broadcasts along lanes
    b2_c = b2.reshape(H2, 1)
    w3_row = w3.reshape(1, H2)      # final-layer weight as a row vector
    b3_s = b3.reshape(1)            # scalar bias -> SMEM

    # --- Batch tile selection (multiple of 128 lanes). --------------------------------
    if B <= 128:
        tile_b = 128                                     # unmasked (1,128) output store
    else:
        # >=2 grid steps when the batch allows (v7x megacore), capped at tile_b_max.
        half = _round_up((B + 1) // 2, 128)
        tile_b = min(tile_b_max, half)
    Bp = _round_up(B, tile_b)
    grid = (Bp // tile_b,)

    # --- Transpose + pad activations to (features, Bp): lane-dense input blocks. ------
    obs_t = obs.T                   # (Do, B)
    act_t = act.T                   # (Da, B)
    if Bp != B:
        pad = Bp - B
        obs_t = jnp.pad(obs_t, ((0, 0), (0, pad)))
        act_t = jnp.pad(act_t, ((0, 0), (0, pad)))

    qT = pl.pallas_call(
        q_mlp_kernel,
        out_shape=jax.ShapeDtypeStruct((1, Bp), jnp.float32),
        grid_spec=pltpu.PrefetchScalarGridSpec(
            num_scalar_prefetch=0,
            grid=grid,
            in_specs=[
                # Batch-tiled activations, batch on the lane axis.
                pl.BlockSpec((obs_dim, tile_b), lambda i: (0, i)),
                pl.BlockSpec((act_dim, tile_b), lambda i: (0, i)),
                # Weights / biases: constant block index -> VMEM-resident across the
                # batch grid (no per-step re-DMA).
                pl.BlockSpec(w1o_t.shape, lambda i: (0, 0)),
                pl.BlockSpec(w1a_t.shape, lambda i: (0, 0)),
                pl.BlockSpec(b1_c.shape, lambda i: (0, 0)),
                pl.BlockSpec(w2_t.shape, lambda i: (0, 0)),
                pl.BlockSpec(b2_c.shape, lambda i: (0, 0)),
                pl.BlockSpec(w3_row.shape, lambda i: (0, 0)),
                # Scalar bias of the output layer lives in SMEM.
                pl.BlockSpec((1,), lambda i: (0,),
                             memory_space=pltpu.MemorySpace.SMEM),
            ],
            out_specs=pl.BlockSpec((1, tile_b), lambda i: (0, i)),
        ),
        compiler_params=pltpu.CompilerParams(
            dimension_semantics=("parallel",)),
    )(obs_t, act_t, w1o_t, w1a_t, b1_c, w2_t, b2_c, w3_row, b3_s)
    # (1, Bp) with batch on lanes -> (B,)   (== torch.squeeze(q, -1))
    return qT[0, :B]


def init_params(key, obs_dim, act_dim, hidden_sizes):
    """Deterministic PyTorch-style (uniform +/- 1/sqrt(fan_in)) Linear init."""
    sizes = [obs_dim + act_dim] + list(hidden_sizes) + [1]
    params = []
    for i in range(len(sizes) - 1):
        fan_in, fan_out = sizes[i], sizes[i + 1]
        key, kw, kb = jax.random.split(key, 3)
        bound = 1.0 / jnp.sqrt(fan_in)
        w = jax.random.uniform(kw, (fan_in, fan_out), jnp.float32, -bound, bound)
        b = jax.random.uniform(kb, (1, fan_out), jnp.float32, -bound, bound)
        params += [w, b]
    return tuple(params)


def reference(obs, act, params):
    """Pure-JAX reference of the same MLP for correctness check."""
    w1, b1, w2, b2, w3, b3 = params
    x = jnp.concatenate([obs, act], axis=-1)
    h1 = jnp.maximum(x @ w1 + b1, 0.0)
    h2 = jnp.maximum(h1 @ w2 + b2, 0.0)
    return jnp.squeeze(h2 @ w3 + b3, -1)


if __name__ == "__main__":
    obs_dim, act_dim = 8, 4
    hidden_sizes = (32, 32)

    key = jax.random.PRNGKey(0)
    k_obs, k_act, k_params = jax.random.split(key, 3)
    params = init_params(k_params, obs_dim, act_dim, hidden_sizes)

    q_fn = jax.jit(mlp_q_function)

    # Small smoke test (single grid step, 128-lane padded output tile).
    batch = 8
    obs = jax.random.normal(k_obs, (batch, obs_dim), jnp.float32)
    act = jax.random.normal(k_act, (batch, act_dim), jnp.float32)
    q = jax.block_until_ready(q_fn(obs, act, params))
    q_ref = reference(obs, act, params)
    assert q.shape == (batch,), q.shape
    assert jnp.allclose(q, q_ref, atol=1e-4, rtol=1e-4), (q, q_ref)

    # Larger batch exercises the parallel batch grid (>=2 steps), padding and
    # lane-dense transposed input tiles.
    batch2 = 600
    k_obs2, k_act2 = jax.random.split(jax.random.PRNGKey(1))
    obs2 = jax.random.normal(k_obs2, (batch2, obs_dim), jnp.float32)
    act2 = jax.random.normal(k_act2, (batch2, act_dim), jnp.float32)
    q2 = jax.block_until_ready(q_fn(obs2, act2, params))
    q2_ref = reference(obs2, act2, params)
    assert q2.shape == (batch2,), q2.shape
    assert jnp.allclose(q2, q2_ref, atol=1e-4, rtol=1e-4), (q2, q2_ref)

    print("KERNEL_OK")
</pallas_src>

<mosaic_0001>
module attributes {stable_mosaic.version = 11 : i64} {
  func.func @q_mlp_kernel(%arg0: i32, %arg1: memref<8x128xf32, #tpu.memory_space<vmem>>, %arg2: memref<4x128xf32, #tpu.memory_space<vmem>>, %arg3: memref<32x8xf32, #tpu.memory_space<vmem>>, %arg4: memref<32x4xf32, #tpu.memory_space<vmem>>, %arg5: memref<32x1xf32, #tpu.memory_space<vmem>>, %arg6: memref<32x32xf32, #tpu.memory_space<vmem>>, %arg7: memref<32x1xf32, #tpu.memory_space<vmem>>, %arg8: memref<1x32xf32, #tpu.memory_space<vmem>>, %arg9: memref<1xf32, #tpu.memory_space<smem>>, %arg10: memref<1x128xf32, #tpu.memory_space<vmem>>) attributes {dimension_semantics = [#tpu.dimension_semantics<parallel>], iteration_bounds = array<i64: 1>, scalar_prefetch = 0 : i64, scratch_operands = 0 : i64, tpu.core_type = #tpu.core_type<tc>, window_params = [{transform_indices = @transform_0, window_bounds = array<i64: 8, 128>}, {transform_indices = @transform_1, window_bounds = array<i64: 4, 128>}, {pipeline_mode = #tpu.pipeline_mode<synchronous>, transform_indices = @transform_2, window_bounds = array<i64: 32, 8>}, {pipeline_mode = #tpu.pipeline_mode<synchronous>, transform_indices = @transform_3, window_bounds = array<i64: 32, 4>}, {pipeline_mode = #tpu.pipeline_mode<synchronous>, transform_indices = @transform_4, window_bounds = array<i64: 32, 1>}, {pipeline_mode = #tpu.pipeline_mode<synchronous>, transform_indices = @transform_5, window_bounds = array<i64: 32, 32>}, {pipeline_mode = #tpu.pipeline_mode<synchronous>, transform_indices = @transform_6, window_bounds = array<i64: 32, 1>}, {pipeline_mode = #tpu.pipeline_mode<synchronous>, transform_indices = @transform_7, window_bounds = array<i64: 1, 32>}, {transform_indices = @transform_8, window_bounds = array<i64: 1>}, {transform_indices = @transform_9, window_bounds = array<i64: 1, 128>}]} {
    %c0 = arith.constant 0 : index
    %c0_0 = arith.constant 0 : index
    %0 = vector.load %arg3[%c0, %c0_0] : memref<32x8xf32, #tpu.memory_space<vmem>>, vector<32x8xf32>
    %c0_1 = arith.constant 0 : index
    %c0_2 = arith.constant 0 : index
    %1 = vector.load %arg1[%c0_1, %c0_2] : memref<8x128xf32, #tpu.memory_space<vmem>>, vector<8x128xf32>
    %cst = arith.constant dense<0.000000e+00> : vector<32x128xf32>
    %2 = tpu.matmul %0, %1, %cst {dimension_numbers = #tpu.dot_dimension_numbers<[1], [0], [0], [1], [0, 0, 1, 1], [], []>} : vector<32x8xf32>, vector<8x128xf32>, vector<32x128xf32> -> vector<32x128xf32>
    %c0_3 = arith.constant 0 : index
    %c0_4 = arith.constant 0 : index
    %3 = vector.load %arg4[%c0_3, %c0_4] : memref<32x4xf32, #tpu.memory_space<vmem>>, vector<32x4xf32>
    %c0_5 = arith.constant 0 : index
    %c0_6 = arith.constant 0 : index
    %4 = vector.load %arg2[%c0_5, %c0_6] : memref<4x128xf32, #tpu.memory_space<vmem>>, vector<4x128xf32>
    %cst_7 = arith.constant dense<0.000000e+00> : vector<32x128xf32>
    %5 = tpu.matmul %3, %4, %cst_7 {dimension_numbers = #tpu.dot_dimension_numbers<[1], [0], [0], [1], [0, 0, 1, 1], [], []>} : vector<32x4xf32>, vector<4x128xf32>, vector<32x128xf32> -> vector<32x128xf32>
    %6 = arith.addf %2, %5 : vector<32x128xf32>
    %c0_8 = arith.constant 0 : index
    %c0_9 = arith.constant 0 : index
    %7 = vector.load %arg5[%c0_8, %c0_9] : memref<32x1xf32, #tpu.memory_space<vmem>>, vector<32x1xf32>
    %8 = vector.broadcast %7 : vector<32x1xf32> to vector<32x128xf32>
    %9 = arith.addf %6, %8 : vector<32x128xf32>
    %cst_10 = arith.constant 0.000000e+00 : f32
    %10 = vector.broadcast %cst_10 : f32 to vector<32x128xf32>
    %11 = arith.maximumf %9, %10 : vector<32x128xf32>
    %c0_11 = arith.constant 0 : index
    %c0_12 = arith.constant 0 : index
    %12 = vector.load %arg6[%c0_11, %c0_12] : memref<32x32xf32, #tpu.memory_space<vmem>>, vector<32x32xf32>
    %cst_13 = arith.constant dense<0.000000e+00> : vector<32x128xf32>
    %13 = tpu.matmul %12, %11, %cst_13 {dimension_numbers = #tpu.dot_dimension_numbers<[1], [0], [0], [1], [0, 0, 1, 1], [], []>} : vector<32x32xf32>, vector<32x128xf32>, vector<32x128xf32> -> vector<32x128xf32>
    %c0_14 = arith.constant 0 : index
    %c0_15 = arith.constant 0 : index
    %14 = vector.load %arg7[%c0_14, %c0_15] : memref<32x1xf32, #tpu.memory_space<vmem>>, vector<32x1xf32>
    %15 = vector.broadcast %14 : vector<32x1xf32> to vector<32x128xf32>
    %16 = arith.addf %13, %15 : vector<32x128xf32>
    %cst_16 = arith.constant 0.000000e+00 : f32
    %17 = vector.broadcast %cst_16 : f32 to vector<32x128xf32>
    %18 = arith.maximumf %16, %17 : vector<32x128xf32>
    %c0_17 = arith.constant 0 : index
    %c0_18 = arith.constant 0 : index
    %19 = vector.load %arg8[%c0_17, %c0_18] : memref<1x32xf32, #tpu.memory_space<vmem>>, vector<1x32xf32>
    %cst_19 = arith.constant dense<0.000000e+00> : vector<1x128xf32>
    %20 = tpu.matmul %19, %18, %cst_19 {dimension_numbers = #tpu.dot_dimension_numbers<[1], [0], [0], [1], [0, 0, 1, 1], [], []>} : vector<1x32xf32>, vector<32x128xf32>, vector<1x128xf32> -> vector<1x128xf32>
    %c0_20 = arith.constant 0 : index
    %21 = memref.load %arg9[%c0_20] : memref<1xf32, #tpu.memory_space<smem>>
    %22 = vector.broadcast %21 : f32 to vector<1x128xf32>
    %23 = arith.addf %20, %22 : vector<1x128xf32>
    %c0_21 = arith.constant 0 : index
    %c0_22 = arith.constant 0 : index
    %24 = vector.load %arg10[%c0_21, %c0_22] : memref<1x128xf32, #tpu.memory_space<vmem>>, vector<1x128xf32>
    tpu.vector_store %arg10[%c0_21, %c0_22], %23 {strides = array<i32>} : memref<1x128xf32, #tpu.memory_space<vmem>>, vector<1x128xf32>,
    return
  }
  func.func @transform_0(%arg0: i32) -> (i32, i32) {
    %c0_i32 = arith.constant 0 : i32
    %c0_i32_0 = arith.constant 0 : i32
    return %c0_i32, %arg0 : i32, i32
  }
  func.func @transform_1(%arg0: i32) -> (i32, i32) {
    %c0_i32 = arith.constant 0 : i32
    %c0_i32_0 = arith.constant 0 : i32
    return %c0_i32, %arg0 : i32, i32
  }
  func.func @transform_2(%arg0: i32) -> (i32, i32) {
    %c0_i32 = arith.constant 0 : i32
    %c0_i32_0 = arith.constant 0 : i32
    %c0_i32_1 = arith.constant 0 : i32
    return %c0_i32, %c0_i32_0 : i32, i32
  }
  func.func @transform_3(%arg0: i32) -> (i32, i32) {
    %c0_i32 = arith.constant 0 : i32
    %c0_i32_0 = arith.constant 0 : i32
    %c0_i32_1 = arith.constant 0 : i32
    return %c0_i32, %c0_i32_0 : i32, i32
  }
  func.func @transform_4(%arg0: i32) -> (i32, i32) {
    %c0_i32 = arith.constant 0 : i32
    %c0_i32_0 = arith.constant 0 : i32
    %c0_i32_1 = arith.constant 0 : i32
    return %c0_i32, %c0_i32_0 : i32, i32
  }
  func.func @transform_5(%arg0: i32) -> (i32, i32) {
    %c0_i32 = arith.constant 0 : i32
    %c0_i32_0 = arith.constant 0 : i32
    %c0_i32_1 = arith.constant 0 : i32
    return %c0_i32, %c0_i32_0 : i32, i32
  }
  func.func @transform_6(%arg0: i32) -> (i32, i32) {
    %c0_i32 = arith.constant 0 : i32
    %c0_i32_0 = arith.constant 0 : i32
    %c0_i32_1 = arith.constant 0 : i32
    return %c0_i32, %c0_i32_0 : i32, i32
  }
  func.func @transform_7(%arg0: i32) -> (i32, i32) {
    %c0_i32 = arith.constant 0 : i32
    %c0_i32_0 = arith.constant 0 : i32
    %c0_i32_1 = arith.constant 0 : i32
    return %c0_i32, %c0_i32_0 : i32, i32
  }
  func.func @transform_8(%arg0: i32) -> i32 {
    %c0_i32 = arith.constant 0 : i32
    %c0_i32_0 = arith.constant 0 : i32
    return %c0_i32 : i32
  }
  func.func @transform_9(%arg0: i32) -> (i32, i32) {
    %c0_i32 = arith.constant 0 : i32
    %c0_i32_0 = arith.constant 0 : i32
    return %c0_i32, %arg0 : i32, i32
  }
}

</mosaic_0001>

<bundles_post_ra>
// kernel: mlp_q_function.1
= control target key start
LH: loop header
LB: loop body
LE: loop exit
PB: predicated region body
PF: predicated region fallthrough
CT: control target
= control target key end

     0   :  { %vm56_vm0 = vcmask 1043456   ;;  %vm43_vm1 = vcmask 31744   ;;  %v588_v3 = vmov 0   ;;  %vm145_vm2 = vcmask 64512   ;;  %s730_s1 = inlined_call_operand.vmem [shape: f32[4,128], index: 1, kind: input, shape index: {}]   ;;  %s731_s3 = inlined_call_operand.vmem [shape: f32[32,4], index: 3, kind: input, shape index: {}]   ;;  %s732_s0 = inlined_call_operand.vmem [shape: f32[8,128], index: 0, kind: input, shape index: {}]   ;;  %s733_s4 = inlined_call_operand.vmem [shape: f32[32,1], index: 4, kind: input, shape index: {}]   ;;  %s734_s2 = inlined_call_operand.vmem [shape: f32[32,8], index: 2, kind: input, shape index: {}]   ;;  %s735_s6 = inlined_call_operand.vmem [shape: f32[32,1], index: 6, kind: input, shape index: {}]   ;;  %s736_s5 = inlined_call_operand.vmem [shape: f32[32,32], index: 5, kind: input, shape index: {}]   ;;  %s737_s7 = inlined_call_operand.vmem [shape: f32[1,32], index: 7, kind: input, shape index: {}]   ;;  %s738_s8 = inlined_call_operand.<no memory space> [shape: f32[1], index: 8, kind: input, shape index: {}]   ;;  %s739_s9 = inlined_call_operand.vmem [shape: f32[1,128], index: 9, kind: output, shape index: {}]  }
   0x1   :  { %v42_v0 = vld [vmem:[%s730_s1] sm:$0xf]  ;;  %v39_v2 = vld [vmem:[%s731_s3 + $0x8] sm:$0xff]  ;;  %586 = vset.pattern.permute.xlu0 %v588_v3  ;;  %587 = vset.pattern.permute.xlu1 %v588_v3  ;;  %v40_v5 = vld [vmem:[%s731_s3 + $0x10] sm:$0xff]  ;;  %vm303_vm3 = vcmask 261120   ;;  %v589_v41 = vmov 0.0|0.0   ;;  %v407_v62 = vstv %s738_s8 }
   0x2   :  { %v38_v1 = vld [vmem:[%s731_s3] sm:$0xff]  ;;  %523 = vmatprep.subr.msk.mxu0 %vm56_vm0, %v42_v0  ;;  %v245_v7 = vld [vmem:[%s733_s4 + $0x10] sm:$0xff]  ;;  %v41_v8 = vld [vmem:[%s731_s3 + $0x18] sm:$0xff]  ;;  %vm590_vm4 = vmmov 0   ;;  %v591_v42 = vmov 0.0  }
   0x3   :  { %525 = vmatprep.mubr.msk.f32.mxu0 %vm43_vm1, %v38_v1  ;;  %v37_v4 = vld [vmem:[%s732_s0] sm:$0xff]  ;;  %524 = vmatpush3.msk.msra.mxu0 %vm56_vm0, %v42_v0  ;;  %v244_v10 = vld [vmem:[%s733_s4 + $0x8] sm:$0xff]  ;;  %v246_v11 = vld [vmem:[%s733_s4 + $0x18] sm:$0xff] }
   0x4   :  { %526 = vmatmul.mubr.msk.f32.vlgmr.msra.gmra.mrb[0].mxu0 %vm43_vm1, %v39_v2  ;;  %531 = vmatprep.subr.mxu0 %v37_v4  ;;  %v243_v6 = vld [vmem:[%s733_s4] sm:$0xff]  ;;  %v34_v12 = vld [vmem:[%s734_s2 + $0x8] sm:$0xff]  ;;  %v35_v13 = vld [vmem:[%s734_s2 + $0x10] sm:$0xff] }
   0x5   :  { %532 = vmatpush3.msra.mxu0 %v37_v4  ;;  %528 = vmatprep.mubr.msk.f32.mxu0 %vm43_vm1, %v40_v5  ;;  %v33_v9 = vld [vmem:[%s734_s2] sm:$0xff]  ;;  %v280_v15 = vld [vmem:[%s735_s6 + $0x8] sm:$0xff]  ;;  %v36_v16 = vld [vmem:[%s734_s2 + $0x18] sm:$0xff] }
   0x6   :  { %249 = vperm.xlu0 %586, %v243_v6   ;;  %259 = vperm.xlu1 %587, %v245_v7   ;;  %v279_v14 = vld [vmem:[%s735_s6] sm:$0xff]  ;;  %v281_v17 = vld [vmem:[%s735_s6 + $0x10] sm:$0xff]  ;;  %v282_v18 = vld [vmem:[%s735_s6 + $0x18] sm:$0xff] }
   0x7   :  { %v275_v19 = vld [vmem:[%s736_s5] sm:$0xff]  ;;  %v276_v38 = vld [vmem:[%s736_s5 + $0x8] sm:$0xff]  ;;  %v277_v39 = vld [vmem:[%s736_s5 + $0x10] sm:$0xff] }
   0x8   :  { %529 = vmatmul.mubr.msk.f32.gmra.mrb[2].mxu0 %vm43_vm1, %v41_v8  ;;  %547 = vmatprep.mubr.msk.f32.mxu1 %vm303_vm3, %v275_v19  ;;  %v278_v40 = vld [vmem:[%s736_s5 + $0x18] sm:$0xff]  ;;  %v405_v61 = vld [vmem:[%s737_s7] sm:$0x1] }
   0x9   :  { %533 = vmatprep.mubr.msk.f32.mxu0 %vm145_vm2, %v33_v9 }
   0xa   :  { %254 = vperm.xlu0 %586, %v244_v10   ;;  %264 = vperm.xlu1 %587, %v246_v11  }
   0xc   :  { %534 = vmatmul.mubr.msk.f32.vlgmr.msra.gmra.mrb[0].mxu0 %vm145_vm2, %v34_v12 }
   0xd   :  { %536 = vmatprep.mubr.msk.f32.mxu0 %vm145_vm2, %v35_v13 }
   0xe   :  { %285 = vperm.xlu0 %586, %v279_v14   ;;  %290 = vperm.xlu1 %587, %v280_v15  }
  0x10   :  { %537 = vmatmul.mubr.msk.f32.gmra.mrb[2].mxu0 %vm145_vm2, %v36_v16 }
  0x12   :  { %295 = vperm.xlu0 %586, %v281_v17   ;;  %300 = vperm.xlu1 %587, %v282_v18  }
  0x85   :  { %v250_v20 = vpop.permute.xlu0 %249  ;;  %v260_v21 = vpop.permute.xlu1 %259 }
  0x89   :  { %v255_v22 = vpop.permute.xlu0 %254  ;;  %v265_v28 = vpop.permute.xlu1 %264 }
  0x8d   :  { %v291_v43 = vpop.permute.xlu1 %290  ;;  %v286_v44 = vpop.permute.xlu0 %285 }
  0x91   :  { %v301_v50 = vpop.permute.xlu1 %300  ;;  %v296_v53 = vpop.permute.xlu0 %295 }
  0xdf   :  { %v535_v23 = vpop.f32.mrb[0].mxu0 }
  0xe0   :  { %v268_v24 = vadd.f32 %v535_v23, %v255_v22  ;;  %v224_v25 = vpop.f32.mrb[1].mxu0 }
  0xe1   :  { %v267_v26 = vadd.f32 %v250_v20, %v224_v25 }
  0xe2   :  { %v272_v27 = vmax.f32 %v268_v24, 0.0 }
  0xe3   :  { %v271_v29 = vmax.f32 %v267_v26, 0.0  ;;  %v538_v30 = vpop.f32.mrb[2].mxu0 }
  0xe4   :  { %v270_v31 = vadd.f32 %v538_v30, %v265_v28  ;;  %v234_v32 = vpop.f32.mrb[3].mxu0 }
  0xe5   :  { %v269_v33 = vadd.f32 %v260_v21, %v234_v32  ;;  %v564_v34 = vpack.c.bf16 %v272_v27, %v271_v29 }
  0xe6   :  { %v274_v35 = vmax.f32 %v270_v31, 0.0 }
  0xe7   :  { %v273_v36 = vmax.f32 %v269_v33, 0.0  ;;  %565 = vmatprep.subr.bf16.mxu1 %v564_v34 }
  0xe8   :  { %567 = vmatpush3.bf16.msra.mxu1 %v564_v34 }
  0xe9   :  { %v568_v37 = vpack.c.bf16 %v274_v35, %v273_v36 }
  0xeb   :  { %569 = vmatprep.subr.bf16.mxu1 %v568_v37 }
  0xec   :  { %571 = vmatpush3.bf16.msra.mxu1 %v568_v37 }
  0xed   :  { %572 = vmatprep.subr.bf16.mxu1 %v589_v41 }
  0xef   :  { %548 = vmatmul.mubr.msk.f32.vlgmr.msra.gmra.mrb[0].mxu1 %vm303_vm3, %v276_v38 }
  0xf0   :  { %550 = vmatprep.mubr.msk.f32.mxu1 %vm303_vm3, %v277_v39 }
  0xf3   :  { %551 = vmatmul.mubr.msk.f32.gmra.mrb[2].mxu1 %vm303_vm3, %v278_v40 }
  0xf4   :  { %561 = vmatprep.mubr.msk.f32.mxu1 %vm590_vm4, %v591_v42 }
 0x1c2   :  { %v549_v45 = vpop.f32.mrb[0].mxu1 }
 0x1c3   :  { %v388_v46 = vadd.f32 %v549_v45, %v291_v43  ;;  %v382_v47 = vpop.f32.mrb[1].mxu1 }
 0x1c4   :  { %v383_v48 = vadd.f32 %v382_v47, %v286_v44 }
 0x1c5   :  { %v402_v49 = vmax.f32 %v388_v46, 0.0 }
 0x1c6   :  { %v401_v51 = vmax.f32 %v383_v48, 0.0  ;;  %v552_v52 = vpop.f32.mrb[2].mxu1 }
 0x1c7   :  { %v398_v54 = vadd.f32 %v552_v52, %v301_v50  ;;  %v392_v55 = vpop.f32.mrb[3].mxu1 }
 0x1c8   :  { %v573_v56 = vpack.c.bf16 %v402_v49, %v401_v51  ;;  %v393_v57 = vadd.f32 %v392_v55, %v296_v53 }
 0x1c9   :  { %v404_v58 = vmax.f32 %v398_v54, 0.0 }
 0x1ca   :  { %v403_v59 = vmax.f32 %v393_v57, 0.0  ;;  %574 = vmatpush3.bf16.msra.mxu1 %v573_v56 }
 0x1cb   :  { %575 = vmatprep.subr.bf16.mxu1 %v589_v41 }
 0x1cc   :  { %v576_v60 = vpack.c.bf16 %v404_v58, %v403_v59 }
 0x1ce   :  { %577 = vmatpush3.bf16.msra.mxu1 %v576_v60 }
 0x1d1   :  { %562 = vmatmul.mubr.msk.f32.vlgmr.msra.gmra.mrb[4].mxu1 %vm303_vm3, %v405_v61 }
 0x2a4   :  { %v477_v63 = vpop.f32.mrb[4].mxu1 }
 0x2a5   :  { %v478_v0 = vadd.f32 %v477_v63, %v407_v62  ;;  %v563_v1 = vpop.f32.mrb[5].mxu1 }
 0x2a7   :  { %481 = vst [vmem:[%s739_s9] sm:$0x1] %v478_v0 }

</bundles_post_ra>
